<compile_context>
chip_gen: v7x
topology: tpu7x:2x2x1
jax: 0.10.0
libtpu: 0.0.40
codegen_flags: <defaults>
</compile_context>

<pallas_src>
import jax
import jax.numpy as jnp
from jax import lax
from jax.experimental import pallas as pl
from jax.experimental.pallas import tpu as pltpu

LN_EPS = 1e-5
_DMA_WINDOW = 8            # outstanding row DMAs in the large-vocab path
_ONEHOT_MAX_V = 2048       # one-hot MXU gather only for small vocabularies
_ONEHOT_MAX_TABLE = 16 << 20  # ...and only if the table comfortably fits VMEM


def _round_up(x, m):
    return (x + m - 1) // m * m


def _layer_norm_rows(emb_f32, g, b):
    """LayerNorm over the last dim of an (T, D) f32 tile (biased variance)."""
    mean = jnp.mean(emb_f32, axis=-1, keepdims=True)
    xc = emb_f32 - mean
    var = jnp.mean(xc * xc, axis=-1, keepdims=True)
    return xc * lax.rsqrt(var + LN_EPS) * g + b


# ---------------------------------------------------------------------------
# Path A: small vocab — VMEM-resident table, one-hot MXU gather.
# ---------------------------------------------------------------------------
def _embed_ln_resident_kernel(ids_ref, w_ref, g_ref, b_ref, out_ref):
    # ids_ref: (T, 1) int32 token ids for this block (regular data input)
    # w_ref:   (V, D) embedding table, VMEM-resident (constant index_map)
    # g_ref/b_ref: (1, D) f32 LayerNorm affine params (VMEM-resident)
    # out_ref: (T, D) f32
    T = ids_ref.shape[0]
    V = w_ref.shape[0]
    ids = ids_ref[...]                                      # (T, 1)
    vocab_iota = lax.broadcasted_iota(jnp.int32, (T, V), 1)  # varies along lanes
    onehot = (vocab_iota == ids).astype(w_ref.dtype)        # (T, V)
    # Gather T rows as one MXU matmul with f32 accumulation.
    emb = jnp.dot(onehot, w_ref[...], preferred_element_type=jnp.float32)
    y = _layer_norm_rows(emb, g_ref[...], b_ref[...])
    out_ref[...] = y.astype(out_ref.dtype)


# ---------------------------------------------------------------------------
# Path B: large vocab — table in HBM, windowed manual DMA row gather.
# ---------------------------------------------------------------------------
def _embed_ln_dma_kernel(ids_ref, w_hbm, g_ref, b_ref, out_ref, stage_ref, sems):
    # ids_ref: (num_blocks, T) int32 in SMEM (scalar-prefetched)
    # w_hbm:   (V, D) embedding table left in HBM (memory_space=pl.ANY)
    # stage_ref: (T, D) VMEM staging buffer in the table's native dtype
    # sems:    DMA semaphores, _DMA_WINDOW deep
    blk = pl.program_id(0)
    T = out_ref.shape[0]

    def _copy(t):
        row = ids_ref[blk, t]
        return pltpu.make_async_copy(
            w_hbm.at[pl.ds(row, 1), :],
            stage_ref.at[pl.ds(t, 1), :],
            sems.at[t % _DMA_WINDOW],
        )

    # Prime the window, then keep _DMA_WINDOW row fetches in flight.
    @pl.loop(0, min(_DMA_WINDOW, T))
    def _(t):
        _copy(t).start()

    @pl.loop(0, T)
    def _(t):
        _copy(t).wait()

        @pl.when(t + _DMA_WINDOW < T)
        def _():
            _copy(t + _DMA_WINDOW).start()

    emb = stage_ref[...].astype(jnp.float32)                # (T, D)
    y = _layer_norm_rows(emb, g_ref[...], b_ref[...])
    out_ref[...] = y.astype(out_ref.dtype)


# ---------------------------------------------------------------------------
# Wrapper
# ---------------------------------------------------------------------------
def frozen_stable_embedding(x, weight, ln_weight, ln_bias, *, block_tokens=None):
    """x: (B, S) int token ids; weight: (V, D); ln_weight/ln_bias: (D,)."""
    B, S = x.shape
    V, D = weight.shape
    N = B * S
    itemsize = jnp.dtype(weight.dtype).itemsize
    table_bytes = V * D * itemsize

    # Token-block size: big enough to amortize per-step overhead, multiple of
    # 8 for dense sublanes, bounded so (T, D) f32 tiles stay modest in VMEM.
    if block_tokens is None:
        T = min(512, _round_up(N, 8))
        max_t_by_vmem = max(8, ((4 << 20) // (D * 4)) // 8 * 8)
        T = max(8, min(T, max_t_by_vmem))
    else:
        T = _round_up(block_tokens, 8)
    N_pad = _round_up(N, T)
    num_blocks = N_pad // T

    # Clamp ids (OOB ids would otherwise gather garbage with no runtime error)
    # and pad to a whole number of token blocks (pad rows use id 0, sliced off).
    ids = jnp.clip(x.reshape(N).astype(jnp.int32), 0, V - 1)
    ids_pad = jnp.pad(ids, (0, N_pad - N))
    g = ln_weight.reshape(1, D).astype(jnp.float32)
    b = ln_bias.reshape(1, D).astype(jnp.float32)

    use_onehot = (V <= _ONEHOT_MAX_V) and (table_bytes <= _ONEHOT_MAX_TABLE)

    if use_onehot:
        needed = (table_bytes + 2 * T * D * 4 + 2 * T * 4
                  + 4 * D * 4 + T * V * 4 + (2 << 20))
        vmem_limit = min(48 << 20, max(16 << 20, needed))
        out = pl.pallas_call(
            _embed_ln_resident_kernel,
            out_shape=jax.ShapeDtypeStruct((N_pad, D), jnp.float32),
            grid=(num_blocks,),
            in_specs=[
                pl.BlockSpec((T, 1), lambda i: (i, 0)),     # ids (as data)
                pl.BlockSpec((V, D), lambda i: (0, 0)),     # table: VMEM-resident
                pl.BlockSpec((1, D), lambda i: (0, 0)),     # ln_weight
                pl.BlockSpec((1, D), lambda i: (0, 0)),     # ln_bias
            ],
            out_specs=pl.BlockSpec((T, D), lambda i: (i, 0)),
            compiler_params=pltpu.CompilerParams(
                dimension_semantics=("parallel",),
                vmem_limit_bytes=vmem_limit,
            ),
        )(ids_pad.reshape(N_pad, 1), weight, g, b)
    else:
        needed = (T * D * itemsize + 2 * T * D * 4 + 4 * D * 4 + (2 << 20))
        vmem_limit = min(48 << 20, max(16 << 20, needed))
        ids_blocks = ids_pad.reshape(num_blocks, T)
        out = pl.pallas_call(
            _embed_ln_dma_kernel,
            out_shape=jax.ShapeDtypeStruct((N_pad, D), jnp.float32),
            grid_spec=pltpu.PrefetchScalarGridSpec(
                num_scalar_prefetch=1,                      # ids -> SMEM
                grid=(num_blocks,),
                in_specs=[
                    pl.BlockSpec(memory_space=pl.ANY),      # table stays in HBM
                    pl.BlockSpec((1, D), lambda i, ids: (0, 0)),
                    pl.BlockSpec((1, D), lambda i, ids: (0, 0)),
                ],
                out_specs=pl.BlockSpec((T, D), lambda i, ids: (i, 0)),
                scratch_shapes=[
                    pltpu.VMEM((T, D), weight.dtype),
                    pltpu.SemaphoreType.DMA((_DMA_WINDOW,)),
                ],
            ),
            compiler_params=pltpu.CompilerParams(
                dimension_semantics=("parallel",),
                vmem_limit_bytes=vmem_limit,
            ),
        )(ids_blocks, weight, g, b)

    return out[:N].reshape(B, S, D)


def _reference(x, weight, ln_weight, ln_bias):
    emb = weight[x].astype(jnp.float32)                     # (B, S, D)
    mean = jnp.mean(emb, axis=-1, keepdims=True)
    var = jnp.mean((emb - mean) ** 2, axis=-1, keepdims=True)
    return (emb - mean) * lax.rsqrt(var + LN_EPS) * ln_weight + ln_bias


if __name__ == "__main__":
    key = jax.random.PRNGKey(0)
    k_w, k_g, k_b, k_x = jax.random.split(key, 4)

    V, D = 64, 128           # num_embeddings, embedding_dim (D lane-aligned)
    B, S = 2, 8

    weight = jax.random.normal(k_w, (V, D), dtype=jnp.float32)
    ln_weight = 1.0 + 0.1 * jax.random.normal(k_g, (D,), dtype=jnp.float32)
    ln_bias = 0.1 * jax.random.normal(k_b, (D,), dtype=jnp.float32)
    x = jax.random.randint(k_x, (B, S), 0, V, dtype=jnp.int32)

    out = frozen_stable_embedding(x, weight, ln_weight, ln_bias)
    out = jax.block_until_ready(out)

    ref = _reference(x, weight, ln_weight, ln_bias)
    assert out.shape == (B, S, D) and out.dtype == jnp.float32
    assert jnp.allclose(out, ref, atol=1e-5, rtol=1e-5)

    print("KERNEL_OK")
</pallas_src>

<mosaic_0001>
module attributes {stable_mosaic.version = 11 : i64} {
  func.func @_embed_ln_resident_kernel(%arg0: i32, %arg1: memref<16x1xi32, #tpu.memory_space<vmem>>, %arg2: memref<64x128xf32, #tpu.memory_space<vmem>>, %arg3: memref<1x128xf32, #tpu.memory_space<vmem>>, %arg4: memref<1x128xf32, #tpu.memory_space<vmem>>, %arg5: memref<16x128xf32, #tpu.memory_space<vmem>>) attributes {dimension_semantics = [#tpu.dimension_semantics<parallel>], iteration_bounds = array<i64: 1>, scalar_prefetch = 0 : i64, scratch_operands = 0 : i64, tpu.core_type = #tpu.core_type<tc>, window_params = [{transform_indices = @transform_0, window_bounds = array<i64: 16, 1>}, {pipeline_mode = #tpu.pipeline_mode<synchronous>, transform_indices = @transform_1, window_bounds = array<i64: 64, 128>}, {pipeline_mode = #tpu.pipeline_mode<synchronous>, transform_indices = @transform_2, window_bounds = array<i64: 1, 128>}, {pipeline_mode = #tpu.pipeline_mode<synchronous>, transform_indices = @transform_3, window_bounds = array<i64: 1, 128>}, {transform_indices = @transform_4, window_bounds = array<i64: 16, 128>}]} {
    %c0 = arith.constant 0 : index
    %c0_0 = arith.constant 0 : index
    %0 = vector.load %arg1[%c0, %c0_0] : memref<16x1xi32, #tpu.memory_space<vmem>>, vector<16x1xi32>
    %1 = tpu.iota {dimensions = array<i32: 1>} : vector<16x64xi32>
    %2 = vector.broadcast %0 : vector<16x1xi32> to vector<16x64xi32>
    %3 = arith.cmpi eq, %1, %2 : vector<16x64xi32>
    %4 = arith.extui %3 : vector<16x64xi1> to vector<16x64xi32>
    %5 = arith.sitofp %4 : vector<16x64xi32> to vector<16x64xf32>
    %c0_1 = arith.constant 0 : index
    %c0_2 = arith.constant 0 : index
    %6 = vector.load %arg2[%c0_1, %c0_2] : memref<64x128xf32, #tpu.memory_space<vmem>>, vector<64x128xf32>
    %cst = arith.constant dense<0.000000e+00> : vector<16x128xf32>
    %7 = tpu.matmul %5, %6, %cst {dimension_numbers = #tpu.dot_dimension_numbers<[1], [0], [0], [1], [0, 0, 1, 1], [], []>} : vector<16x64xf32>, vector<64x128xf32>, vector<16x128xf32> -> vector<16x128xf32>
    %c0_3 = arith.constant 0 : index
    %c0_4 = arith.constant 0 : index
    %8 = vector.load %arg3[%c0_3, %c0_4] : memref<1x128xf32, #tpu.memory_space<vmem>>, vector<1x128xf32>
    %c0_5 = arith.constant 0 : index
    %c0_6 = arith.constant 0 : index
    %9 = vector.load %arg4[%c0_5, %c0_6] : memref<1x128xf32, #tpu.memory_space<vmem>>, vector<1x128xf32>
    %cst_7 = arith.constant dense<0.000000e+00> : vector<16xf32>
    %10 = vector.multi_reduction <add>, %7, %cst_7 [1] : vector<16x128xf32> to vector<16xf32>
    %11 = vector.shape_cast %10 : vector<16xf32> to vector<16x1xf32>
    %cst_8 = arith.constant 1.280000e+02 : f32
    %12 = vector.broadcast %cst_8 : f32 to vector<16x1xf32>
    %13 = arith.divf %11, %12 : vector<16x1xf32>
    %14 = vector.broadcast %13 : vector<16x1xf32> to vector<16x128xf32>
    %15 = arith.subf %7, %14 : vector<16x128xf32>
    %16 = arith.mulf %15, %15 : vector<16x128xf32>
    %cst_9 = arith.constant dense<0.000000e+00> : vector<16xf32>
    %17 = vector.multi_reduction <add>, %16, %cst_9 [1] : vector<16x128xf32> to vector<16xf32>
    %18 = vector.shape_cast %17 : vector<16xf32> to vector<16x1xf32>
    %cst_10 = arith.constant 1.280000e+02 : f32
    %19 = vector.broadcast %cst_10 : f32 to vector<16x1xf32>
    %20 = arith.divf %18, %19 : vector<16x1xf32>
    %cst_11 = arith.constant 9.99999974E-6 : f32
    %21 = vector.broadcast %cst_11 : f32 to vector<16x1xf32>
    %22 = arith.addf %20, %21 : vector<16x1xf32>
    %23 = math.rsqrt %22 : vector<16x1xf32>
    %24 = vector.broadcast %23 : vector<16x1xf32> to vector<16x128xf32>
    %25 = arith.mulf %15, %24 : vector<16x128xf32>
    %26 = vector.broadcast %8 : vector<1x128xf32> to vector<16x128xf32>
    %27 = arith.mulf %25, %26 : vector<16x128xf32>
    %28 = vector.broadcast %9 : vector<1x128xf32> to vector<16x128xf32>
    %29 = arith.addf %27, %28 : vector<16x128xf32>
    %c0_12 = arith.constant 0 : index
    %c0_13 = arith.constant 0 : index
    %30 = vector.load %arg5[%c0_12, %c0_13] : memref<16x128xf32, #tpu.memory_space<vmem>>, vector<16x128xf32>
    tpu.vector_store %arg5[%c0_12, %c0_13], %29 {strides = array<i32>} : memref<16x128xf32, #tpu.memory_space<vmem>>, vector<16x128xf32>,
    return
  }
  func.func @transform_0(%arg0: i32) -> (i32, i32) {
    %c0_i32 = arith.constant 0 : i32
    %c0_i32_0 = arith.constant 0 : i32
    return %arg0, %c0_i32 : i32, i32
  }
  func.func @transform_1(%arg0: i32) -> (i32, i32) {
    %c0_i32 = arith.constant 0 : i32
    %c0_i32_0 = arith.constant 0 : i32
    %c0_i32_1 = arith.constant 0 : i32
    return %c0_i32, %c0_i32_0 : i32, i32
  }
  func.func @transform_2(%arg0: i32) -> (i32, i32) {
    %c0_i32 = arith.constant 0 : i32
    %c0_i32_0 = arith.constant 0 : i32
    %c0_i32_1 = arith.constant 0 : i32
    return %c0_i32, %c0_i32_0 : i32, i32
  }
  func.func @transform_3(%arg0: i32) -> (i32, i32) {
    %c0_i32 = arith.constant 0 : i32
    %c0_i32_0 = arith.constant 0 : i32
    %c0_i32_1 = arith.constant 0 : i32
    return %c0_i32, %c0_i32_0 : i32, i32
  }
  func.func @transform_4(%arg0: i32) -> (i32, i32) {
    %c0_i32 = arith.constant 0 : i32
    %c0_i32_0 = arith.constant 0 : i32
    return %arg0, %c0_i32 : i32, i32
  }
}

</mosaic_0001>

<bundles_post_ra>
// kernel: tpu_custom_call.1
= control target key start
LH: loop header
LB: loop body
LE: loop exit
PB: predicated region body
PF: predicated region fallthrough
CT: control target
= control target key end

     0   :  { %9 = vsyncpa [#allocation3], 0  ;;  %s381_s0 = inlined_call_operand.vmem [shape: s32[16,1], index: 0, kind: input, shape index: {}]   ;;  %s382_s1 = inlined_call_operand.hbm [shape: f32[64,128], index: 1, kind: input, shape index: {}]   ;;  %s383_s2 = inlined_call_operand.vmem [shape: f32[1,128], index: 2, kind: input, shape index: {}]   ;;  %s384_s3 = inlined_call_operand.vmem [shape: f32[1,128], index: 3, kind: input, shape index: {}]   ;;  %s385_s4 = inlined_call_operand.hbm [shape: f32[16,128], index: 4, kind: output, shape index: {}]  }
   0x1   :  { %10 = vsyncpa [#allocation4], 0  ;;  %s308_s15 = smov [#allocation2]   ;;  %s260_s19 = scalar_lea.hbm %s382_s1, 1024 }
   0x2   :  { %s18_s16 = sshll.u32 %s308_s15, 4  ;;  %p261_p0 = scmp.ne.s32.totalorder %s382_s1, %s260_s19  ;;  %s19_s16 = int_to_ptr.vmem [resolvable:$true] %s18_s16 }
   0x3   :  { %p264_p1 = scmp.lt.u32.totalorder %s260_s19, %s382_s1 }
   0x5   :  { %p266_p2 = pnand %p264_p1, %p261_p0 }
   0x7   :  { %269 = shalt.err (!%p266_p2)
}
   0x8   :  { %s270_s24 = scalar_lea.vmem %s19_s16, 1024  ;;  %p275_p4 = scmp.lt.s32.totalorder %s19_s16, %s19_s16 }
   0x9   :  { %p271_p3 = scmp.ne.s32.totalorder %s19_s16, %s270_s24  ;;  %p276_p5 = scmp.lt.s32.totalorder %s270_s24, %s270_s24 }
   0xb   :  { %p277_p6 = por %p276_p5, %p275_p4 }
   0xd   :  { %p278_p7 = pnand %p277_p6, %p271_p3 }
   0xf   :  { %281 = shalt.err (!%p278_p7)
}
  0x10   :  { %s309_s25 = smov 128   ;;  %s310_s26 = smov 8  }
  0x11   :  { %24 = dma.hbm_to_vmem [thread:$0]  %s382_s1, 1024, %s19_s16, [#allocation3], %s309_s25, %s309_s25, %s310_s26  }
  0x12   :  { %304 = dma.done.wait [#allocation3], 1024  }
  0x13   :  { %305 = vsyncadd [#allocation3], 4294966272  ;;  %v311_v0 = vmov 0   ;;  %v32_v1 = vld [vmem:[%s381_s0] sm:$0xff]  ;;  %v49_v3 = vld [vmem:[#allocation2 + $0x8] sm:$0xff]  ;;  %v34_v15 = vlaneseq  ;;  %vm56_vm0 = vcmask 523264  }
  0x14   :  { %255 = vset.pattern.permute.xlu0 %v311_v0  ;;  %v48_v2 = vld [vmem:[#allocation2] sm:$0xff]  ;;  %v50_v4 = vld [vmem:[#allocation2 + $0x10] sm:$0xff]  ;;  %v51_v5 = vld [vmem:[#allocation2 + $0x18] sm:$0xff]  ;;  %v312_v18 = vmov 0.0   ;;  %s313_s9 = smov [#allocation5]  }
  0x15   :  { %37 = vperm.xlu0 %255, %v32_v1   ;;  %v33_v6 = vld [vmem:[%s381_s0 + $0x8] sm:$0xff]  ;;  %v233_v7 = vpack.c.bf16 %v49_v3, %v48_v2  ;;  %v237_v8 = vpack.c.bf16 %v51_v5, %v50_v4  ;;  %v52_v9 = vld [vmem:[#allocation2 + $0x20] sm:$0xff]  ;;  %v54_v12 = vld [vmem:[#allocation2 + $0x30] sm:$0xff]  ;;  %v35_v16 = vand.u32 127, %v34_v15  ;;  %s186_s10 = sshll.u32 %s313_s9, 4  ;;  %s187_s10 = int_to_ptr.vmem [resolvable:$true] %s186_s10 }
  0x16   :  { %v53_v10 = vld [vmem:[#allocation2 + $0x28] sm:$0xff]  ;;  %v55_v13 = vld [vmem:[#allocation2 + $0x38] sm:$0xff]  ;;  %v202_v39 = vld [vmem:[%s383_s2] ss:$0 sm:$0xff]  ;;  %s282_s11 = scalar_lea.vmem %s187_s10, 256  ;;  %p287_p9 = scmp.lt.s32.totalorder %s187_s10, %s187_s10 }
  0x17   :  { %234 = vmatprep.subr.bf16.mxu0 %v233_v7  ;;  %v241_v11 = vpack.c.bf16 %v53_v10, %v52_v9  ;;  %v245_v14 = vpack.c.bf16 %v55_v13, %v54_v12  ;;  %v203_v41 = vld [vmem:[%s384_s3] ss:$0 sm:$0xff]  ;;  %p283_p8 = scmp.ne.s32.totalorder %s187_s10, %s282_s11  ;;  %p288_p10 = scmp.lt.s32.totalorder %s282_s11, %s282_s11 }
  0x18   :  { %236 = vmatpush3.bf16.msra.mxu0 %v233_v7 }
  0x19   :  { %40 = vperm.xlu0 %255, %v33_v6   ;;  %238 = vmatprep.subr.bf16.mxu0 %v237_v8  ;;  %p289_p11 = por %p288_p10, %p287_p9 }
  0x1b   :  { %p290_p12 = pnand %p289_p11, %p283_p8 }
  0x1c   :  { %240 = vmatpush3.bf16.msra.mxu0 %v237_v8 }
  0x1d   :  { %242 = vmatprep.subr.bf16.mxu0 %v241_v11 }
  0x20   :  { %244 = vmatpush3.bf16.msra.mxu0 %v241_v11 }
  0x21   :  { %246 = vmatprep.subr.bf16.mxu0 %v245_v14 }
  0x24   :  { %248 = vmatpush3.bf16.msra.mxu0 %v245_v14 }
  0x94   :  { %v38_v17 = vpop.permute.xlu0 %37 }
  0x95   :  { %vm42_vm1 = vcmp.eq.s32.totalorder %v35_v16, %v38_v17 }
  0x96   :  { %v198_v19 = vsel %vm42_vm1, 1.0, %v312_v18 }
  0x97   :  { %230 = vmatprep.mubr.msk.f32.mxu0 %vm56_vm0, %v198_v19 }
  0x98   :  { %v41_v20 = vpop.permute.xlu0 %40 }
  0x99   :  { %vm43_vm2 = vcmp.eq.s32.totalorder %v35_v16, %v41_v20 }
  0x9a   :  { %v199_v21 = vsel %vm43_vm2, 1.0, %v312_v18 }
  0x9b   :  { %231 = vmatmul.mubr.msk.f32.vlgmr.msra.gmra.mrb[0].mxu0 %vm56_vm0, %v199_v21 }
 0x16e   :  { %v232_v22 = vpop.f32.mrb[0].mxu0 }
 0x16f   :  { %v129_v23 = vpop.f32.mrb[1].mxu0 }
 0x170   :  { %140 = vadd.xlane.f32.xlu1 %v129_v23 }
 0x174   :  { %142 = vadd.xlane.f32.xlu1 %v232_v22 }
 0x1fd   :  { %v141_v24 = vpop.xlane.xlu1 %140 }
 0x1fe   :  { %v145_v25 = vmul.f32 0.0078125, %v141_v24 }
 0x200   :  { %v147_v26 = vsub.f32 %v129_v23, %v145_v25 }
 0x201   :  { %v143_v27 = vpop.xlane.xlu1 %142 }
 0x202   :  { %v146_v28 = vmul.f32 0.0078125, %v143_v27  ;;  %v149_v29 = vmul.f32 %v147_v26, %v147_v26 }
 0x204   :  { %v148_v30 = vsub.f32 %v232_v22, %v146_v28  ;;  %151 = vadd.xlane.f32.xlu0 %v149_v29 }
 0x206   :  { %v150_v31 = vmul.f32 %v148_v30, %v148_v30 }
 0x208   :  { %153 = vadd.xlane.f32.xlu1 %v150_v31 }
 0x291   :  { %v152_v32 = vpop.xlane.xlu0 %151 }
 0x292   :  { %v155_v33 = vmul.f32 0.0078125, %v152_v32 }
 0x294   :  { %v157_v34 = vadd.f32 1e-05, %v155_v33 }
 0x295   :  { %v154_v35 = vpop.xlane.xlu1 %153 }
 0x296   :  { %256 = vrsqrt.f32 %v157_v34  ;;  %v156_v36 = vmul.f32 0.0078125, %v154_v35 }
 0x298   :  { %v158_v37 = vadd.f32 1e-05, %v156_v36 }
 0x29a   :  { %258 = vrsqrt.f32 %v158_v37 }
 0x2a0   :  { %v257_v38 = vpop.eup %256 }
 0x2a1   :  { %v161_v40 = vmul.f32 %v257_v38, %v147_v26 }
 0x2a3   :  { %v169_v42 = vmul.f32 %v202_v39, %v161_v40 }
 0x2a4   :  { %v259_v43 = vpop.eup %258 }
 0x2a5   :  { %v162_v44 = vmul.f32 %v259_v43, %v148_v30  ;;  %v177_v45 = vadd.f32 %v203_v41, %v169_v42 }
 0x2a7   :  { %v170_v46 = vmul.f32 %v202_v39, %v162_v44  ;;  %179 = vst [vmem:[#allocation5] sm:$0xff] %v177_v45 }
 0x2a9   :  { %v178_v47 = vadd.f32 %v203_v41, %v170_v46 }
 0x2ab   :  { %180 = vst [vmem:[#allocation5 + $0x8] sm:$0xff] %v178_v47 }
 0x2ac   :  { %293 = shalt.err (!%p290_p12)
}
 0x2ad   :  { %s294_s12 = scalar_lea.hbm %s385_s4, 256 }
 0x2ae   :  { %p295_p13 = scmp.ne.s32.totalorder %s385_s4, %s294_s12  ;;  %p298_p0 = scmp.lt.u32.totalorder %s294_s12, %s385_s4 }
 0x2b0   :  { %p300_p1 = pnand %p298_p0, %p295_p13 }
 0x2b2   :  { %303 = shalt.err (!%p300_p1)
}
 0x2b3   :  { %192 = dma.vmem_to_hbm [thread:$0]  %s187_s10, 256, %s385_s4, [#allocation4], %s309_s25, %s309_s25, %s310_s26  }
 0x2b4   :  { %306 = dma.done.wait [#allocation4], 256  }
 0x2b5   :  { %307 = vsyncadd [#allocation4], 4294967040 }
 0x2b6   :  { %196 = vsyncpa [#allocation3], 1 }
 0x2b7   :  { %197 = vsyncpa [#allocation4], 1 }

</bundles_post_ra>
